<compile_context>
chip_gen: v6e
topology: v6e:2x2x1
jax: 0.10.0
libtpu: 0.0.40
codegen_flags: <defaults>
</compile_context>

<pallas_src>
import jax
import jax.numpy as jnp
from jax.experimental import pallas as pl
from jax.experimental.pallas import tpu as pltpu


LANE = 128
MAX_BC_TILE = 256      # sublane tile cap (multiple of 8)
MAX_SLICES = 64        # cap on unrolled lane-partial accumulation slices


def _round_up(x, m):
    return ((x + m - 1) // m) * m


def _round_down(x, m):
    return (x // m) * m


def _cdiv(a, b):
    return (a + b - 1) // b


def _scoped_vmem_limit_bytes():
    """Per-generation scoped-VMEM budget: ~48 MiB on v7x, 96 MiB on v5e/v6e."""
    cap = 64 * 1024 * 1024                      # conservative fallback (v7x physical)
    try:
        info = pltpu.get_tpu_info()
        cap = int(getattr(info, "vmem_capacity_bytes", cap)) or cap
    except Exception:
        pass
    return int(min(96 * 1024 * 1024, (cap * 3) // 4))


def _make_kernel(n_slices, w, tile_s, spc, s_len, need_mask, tile_bc):
    """Build the kernel body with all tiling parameters baked in statically."""

    def kernel(p_ref, l_ref, num_out_ref, den_out_ref, num_acc, den_acc):
        k = pl.program_id(2)

        @pl.when(k == 0)
        def _():
            num_acc[...] = jnp.zeros_like(num_acc)
            den_acc[...] = jnp.zeros_like(den_acc)

        num_par = num_acc[...]
        den_par = den_acc[...]

        if need_mask:
            c = pl.program_id(0)
            # Logical (unclamped) start column of this tile along the full S
            # axis; phantom blocks of the last chunk get rem <= 0 -> all masked.
            rem = s_len - (c * spc + k) * tile_s
            col = jax.lax.broadcasted_iota(jnp.int32, (tile_bc, w), 1)

        for j in range(n_slices):
            sl = slice(j * w, (j + 1) * w)
            pv = p_ref[:, sl].astype(jnp.float32)   # in-kernel upcast (v5e VPU)
            lv = l_ref[:, sl].astype(jnp.float32)
            if need_mask:
                m = col < (rem - j * w)
                pv = jnp.where(m, pv, 0.0)          # mask BOTH operands so
                lv = jnp.where(m, lv, 0.0)          # garbage never propagates
            num_par = num_par + lv * pv
            den_par = den_par + (lv + pv * pv)

        num_acc[...] = num_par
        den_acc[...] = den_par

        # Single lane-dense store per (chunk, bc-tile) at the last S step.
        @pl.when(k == pl.num_programs(2) - 1)
        def _():
            num_out_ref[...] = num_par[None]
            den_out_ref[...] = den_par[None]

    return kernel


def soft_dice_loss(probs, labels, smooth=1e-6):
    """Pallas TPU implementation of SoftDiceLoss.forward."""
    assert probs.shape == labels.shape
    B, C, S = probs.shape
    BC = B * C

    # Row-major reshape is a free view; no jnp.pad anywhere.
    p2 = probs.reshape(BC, S)
    l2 = labels.reshape(BC, S)

    vmem_limit = _scoped_vmem_limit_bytes()

    # ---- BC (sublane) tiling ------------------------------------------------
    if BC <= MAX_BC_TILE:
        tile_bc, n_bc = BC, 1
    else:
        tile_bc, n_bc = MAX_BC_TILE, _cdiv(BC, MAX_BC_TILE)
    bc_out = n_bc * tile_bc          # padded output rows; sliced off in epilogue

    # ---- lane-partial accumulator width (keep output slabs ~<=1 MiB) --------
    w = min(2048, max(LANE, _round_down((1 << 20) // (4 * bc_out), LANE)))

    # ---- S (lane) tiling: VMEM-budget-driven ---------------------------------
    bytes_pair = p2.dtype.itemsize + l2.dtype.itemsize
    if S <= w:
        # One block covering all of S (block == full dim: always legal, no mask).
        w = S
        tile_s, n_slices, n_s_total = S, 1, 1
    else:
        budget_cols = int(0.6 * vmem_limit) // (2 * tile_bc * bytes_pair)
        tile_s = min(_round_down(budget_cols, w), MAX_SLICES * w, _round_down(S, w))
        if n_bc == 1:
            # Keep >=2 S-blocks so the parallel chunk axis can feed both v7x cores.
            tile_s = min(tile_s, _round_up(_cdiv(S, 2), w))
        tile_s = max(tile_s, w)
        n_slices = tile_s // w
        n_s_total = _cdiv(S, tile_s)

    # ---- parallel chunk axis over S (v7x megacore; harmless on v5e/v6e) ------
    n_chunks = 2 if (n_bc == 1 and n_s_total >= 2) else 1
    spc = _cdiv(n_s_total, n_chunks)               # S-blocks per chunk
    has_phantom = n_chunks * spc != n_s_total      # last chunk has an empty step
    need_mask = (S % tile_s != 0) or has_phantom

    if has_phantom:
        last_blk = n_s_total - 1

        def s_block(c, k):
            # Clamp phantom blocks to a valid DMA source; their contribution
            # is zeroed by the in-kernel mask (rem <= 0).
            return jnp.minimum(c * spc + k, last_blk)
    else:
        def s_block(c, k):
            return c * spc + k

    grid = (n_chunks, n_bc, spc)
    kernel = _make_kernel(n_slices, w, tile_s, spc, S, need_mask, tile_bc)

    num, den = pl.pallas_call(
        kernel,
        out_shape=(
            jax.ShapeDtypeStruct((n_chunks, bc_out, w), jnp.float32),
            jax.ShapeDtypeStruct((n_chunks, bc_out, w), jnp.float32),
        ),
        grid_spec=pltpu.PrefetchScalarGridSpec(
            num_scalar_prefetch=0,
            grid=grid,
            in_specs=[
                pl.BlockSpec((tile_bc, tile_s), lambda c, i, k: (i, s_block(c, k))),
                pl.BlockSpec((tile_bc, tile_s), lambda c, i, k: (i, s_block(c, k))),
            ],
            out_specs=[
                pl.BlockSpec((1, tile_bc, w), lambda c, i, k: (c, i, 0)),
                pl.BlockSpec((1, tile_bc, w), lambda c, i, k: (c, i, 0)),
            ],
            scratch_shapes=[
                pltpu.VMEM((tile_bc, w), jnp.float32),
                pltpu.VMEM((tile_bc, w), jnp.float32),
            ],
        ),
        compiler_params=pltpu.CompilerParams(
            dimension_semantics=("parallel", "parallel", "arbitrary"),
            vmem_limit_bytes=vmem_limit,
        ),
    )(p2, l2)

    # Tiny O(BC * w) epilogue: fold chunk partials + lane partials, drop the
    # padded/garbage BC rows, then form the dice ratio (smooth added once).
    num = num.sum(axis=(0, 2))[:BC]
    den = den.sum(axis=(0, 2))[:BC]
    ratio = (2.0 * num) / (den + smooth)
    return 1.0 - jnp.mean(ratio)


def soft_dice_loss_ref(probs, labels, smooth=1e-6):
    """Pure-JAX reference matching the PyTorch module."""
    numerator = 2.0 * jnp.sum(labels * probs, axis=2)
    denominator = jnp.sum(labels + probs ** 2, axis=2) + smooth
    return 1.0 - jnp.mean(numerator / denominator)


if __name__ == "__main__":
    key = jax.random.PRNGKey(0)
    k1, k2, k3, k4 = jax.random.split(key, 4)

    # Case 1: small S (single block, no masking path).
    B, C, S = 2, 4, 300
    probs = jax.nn.sigmoid(jax.random.normal(k1, (B, C, S), dtype=jnp.float32))
    labels = (jax.random.uniform(k2, (B, C, S)) > 0.5).astype(jnp.float32)
    loss = jax.block_until_ready(soft_dice_loss(probs, labels))
    ref = jax.block_until_ready(soft_dice_loss_ref(probs, labels))
    assert jnp.allclose(loss, ref, rtol=1e-5, atol=1e-6), (loss, ref)

    # Case 2: larger S (exercises the chunked parallel axis + ragged-S masking).
    B, C, S = 2, 4, 5000
    probs2 = jax.nn.sigmoid(jax.random.normal(k3, (B, C, S), dtype=jnp.float32))
    labels2 = (jax.random.uniform(k4, (B, C, S)) > 0.5).astype(jnp.float32)
    loss2 = jax.block_until_ready(soft_dice_loss(probs2, labels2))
    ref2 = jax.block_until_ready(soft_dice_loss_ref(probs2, labels2))
    assert jnp.allclose(loss2, ref2, rtol=1e-5, atol=1e-6), (loss2, ref2)

    # Case 3: bf16 inputs (halved HBM traffic; kernel upcasts to f32 internally).
    loss3 = jax.block_until_ready(
        soft_dice_loss(probs2.astype(jnp.bfloat16), labels2.astype(jnp.bfloat16)))
    ref3 = jax.block_until_ready(
        soft_dice_loss_ref(probs2.astype(jnp.bfloat16).astype(jnp.float32),
                           labels2.astype(jnp.bfloat16).astype(jnp.float32)))
    assert jnp.allclose(loss3, ref3, rtol=1e-4, atol=1e-5), (loss3, ref3)

    print("KERNEL_OK")
</pallas_src>

<mosaic_0001>
module attributes {stable_mosaic.version = 11 : i64} {
  func.func @kernel(%arg0: i32, %arg1: i32, %arg2: i32, %arg3: memref<8x300xf32, #tpu.memory_space<vmem>>, %arg4: memref<8x300xf32, #tpu.memory_space<vmem>>, %arg5: memref<1x8x300xf32, #tpu.memory_space<vmem>>, %arg6: memref<1x8x300xf32, #tpu.memory_space<vmem>>, %arg7: memref<8x300xf32, #tpu.memory_space<vmem>>, %arg8: memref<8x300xf32, #tpu.memory_space<vmem>>) attributes {dimension_semantics = [#tpu.dimension_semantics<parallel>, #tpu.dimension_semantics<parallel>, #tpu.dimension_semantics<arbitrary>], iteration_bounds = array<i64: 1, 1, 1>, scalar_prefetch = 0 : i64, scratch_operands = 2 : i64, tpu.core_type = #tpu.core_type<tc>, window_params = [{transform_indices = @transform_0, window_bounds = array<i64: 8, 300>}, {transform_indices = @transform_1, window_bounds = array<i64: 8, 300>}, {transform_indices = @transform_2, window_bounds = array<i64: 1, 8, 300>}, {transform_indices = @transform_3, window_bounds = array<i64: 1, 8, 300>}]} {
    %c0_i32 = arith.constant 0 : i32
    %0 = arith.cmpi eq, %arg2, %c0_i32 : i32
    %1 = arith.extui %0 : i1 to i32
    %c0_i32_0 = arith.constant 0 : i32
    %2 = arith.cmpi ne, %1, %c0_i32_0 : i32
    scf.if %2 {
      %cst = arith.constant 0.000000e+00 : f32
      %17 = vector.broadcast %cst : f32 to vector<8x300xf32>
      %c0_14 = arith.constant 0 : index
      %c0_15 = arith.constant 0 : index
      %18 = vector.load %arg7[%c0_14, %c0_15] : memref<8x300xf32, #tpu.memory_space<vmem>>, vector<8x300xf32>
      tpu.vector_store %arg7[%c0_14, %c0_15], %17 {strides = array<i32>} : memref<8x300xf32, #tpu.memory_space<vmem>>, vector<8x300xf32>,
      %cst_16 = arith.constant 0.000000e+00 : f32
      %19 = vector.broadcast %cst_16 : f32 to vector<8x300xf32>
      %c0_17 = arith.constant 0 : index
      %c0_18 = arith.constant 0 : index
      %20 = vector.load %arg8[%c0_17, %c0_18] : memref<8x300xf32, #tpu.memory_space<vmem>>, vector<8x300xf32>
      tpu.vector_store %arg8[%c0_17, %c0_18], %19 {strides = array<i32>} : memref<8x300xf32, #tpu.memory_space<vmem>>, vector<8x300xf32>,
    } else {
    }
    %c0 = arith.constant 0 : index
    %c0_1 = arith.constant 0 : index
    %3 = vector.load %arg7[%c0, %c0_1] : memref<8x300xf32, #tpu.memory_space<vmem>>, vector<8x300xf32>
    %c0_2 = arith.constant 0 : index
    %c0_3 = arith.constant 0 : index
    %4 = vector.load %arg8[%c0_2, %c0_3] : memref<8x300xf32, #tpu.memory_space<vmem>>, vector<8x300xf32>
    %c0_4 = arith.constant 0 : index
    %c0_5 = arith.constant 0 : index
    %5 = vector.load %arg3[%c0_4, %c0_5] : memref<8x300xf32, #tpu.memory_space<vmem>>, vector<8x300xf32>
    %c0_6 = arith.constant 0 : index
    %c0_7 = arith.constant 0 : index
    %6 = vector.load %arg4[%c0_6, %c0_7] : memref<8x300xf32, #tpu.memory_space<vmem>>, vector<8x300xf32>
    %7 = arith.mulf %6, %5 : vector<8x300xf32>
    %8 = arith.addf %3, %7 : vector<8x300xf32>
    %9 = arith.mulf %5, %5 : vector<8x300xf32>
    %10 = arith.addf %6, %9 : vector<8x300xf32>
    %11 = arith.addf %4, %10 : vector<8x300xf32>
    %c0_8 = arith.constant 0 : index
    %c0_9 = arith.constant 0 : index
    %12 = vector.load %arg7[%c0_8, %c0_9] : memref<8x300xf32, #tpu.memory_space<vmem>>, vector<8x300xf32>
    tpu.vector_store %arg7[%c0_8, %c0_9], %8 {strides = array<i32>} : memref<8x300xf32, #tpu.memory_space<vmem>>, vector<8x300xf32>,
    %c0_10 = arith.constant 0 : index
    %c0_11 = arith.constant 0 : index
    %13 = vector.load %arg8[%c0_10, %c0_11] : memref<8x300xf32, #tpu.memory_space<vmem>>, vector<8x300xf32>
    tpu.vector_store %arg8[%c0_10, %c0_11], %11 {strides = array<i32>} : memref<8x300xf32, #tpu.memory_space<vmem>>, vector<8x300xf32>,
    %c0_i32_12 = arith.constant 0 : i32
    %14 = arith.cmpi eq, %arg2, %c0_i32_12 : i32
    %15 = arith.extui %14 : i1 to i32
    %c0_i32_13 = arith.constant 0 : i32
    %16 = arith.cmpi ne, %15, %c0_i32_13 : i32
    scf.if %16 {
      %17 = vector.shape_cast %8 : vector<8x300xf32> to vector<1x8x300xf32>
      %c0_14 = arith.constant 0 : index
      %c0_15 = arith.constant 0 : index
      %c0_16 = arith.constant 0 : index
      %18 = vector.load %arg5[%c0_14, %c0_15, %c0_16] : memref<1x8x300xf32, #tpu.memory_space<vmem>>, vector<1x8x300xf32>
      tpu.vector_store %arg5[%c0_14, %c0_15, %c0_16], %17 {strides = array<i32>} : memref<1x8x300xf32, #tpu.memory_space<vmem>>, vector<1x8x300xf32>,
      %19 = vector.shape_cast %11 : vector<8x300xf32> to vector<1x8x300xf32>
      %c0_17 = arith.constant 0 : index
      %c0_18 = arith.constant 0 : index
      %c0_19 = arith.constant 0 : index
      %20 = vector.load %arg6[%c0_17, %c0_18, %c0_19] : memref<1x8x300xf32, #tpu.memory_space<vmem>>, vector<1x8x300xf32>
      tpu.vector_store %arg6[%c0_17, %c0_18, %c0_19], %19 {strides = array<i32>} : memref<1x8x300xf32, #tpu.memory_space<vmem>>, vector<1x8x300xf32>,
    } else {
    }
    return
  }
  func.func @transform_0(%arg0: i32, %arg1: i32, %arg2: i32) -> (i32, i32) {
    %c1_i32 = arith.constant 1 : i32
    %0 = arith.muli %arg0, %c1_i32 : i32
    %1 = arith.addi %0, %arg2 : i32
    %c0_i32 = arith.constant 0 : i32
    return %arg1, %1 : i32, i32
  }
  func.func @transform_1(%arg0: i32, %arg1: i32, %arg2: i32) -> (i32, i32) {
    %c1_i32 = arith.constant 1 : i32
    %0 = arith.muli %arg0, %c1_i32 : i32
    %1 = arith.addi %0, %arg2 : i32
    %c0_i32 = arith.constant 0 : i32
    return %arg1, %1 : i32, i32
  }
  func.func @transform_2(%arg0: i32, %arg1: i32, %arg2: i32) -> (i32, i32, i32) {
    %c0_i32 = arith.constant 0 : i32
    %c0_i32_0 = arith.constant 0 : i32
    return %arg0, %arg1, %c0_i32 : i32, i32, i32
  }
  func.func @transform_3(%arg0: i32, %arg1: i32, %arg2: i32) -> (i32, i32, i32) {
    %c0_i32 = arith.constant 0 : i32
    %c0_i32_0 = arith.constant 0 : i32
    return %arg0, %arg1, %c0_i32 : i32, i32, i32
  }
}

</mosaic_0001>

<bundles_post_ra>
// kernel: tpu_custom_call.1
= control target key start
LH: loop header
LB: loop body
LE: loop exit
PB: predicated region body
PF: predicated region fallthrough
CT: control target
= control target key end

     0   :  { %9 = vsyncpa [#allocation5], 0  ;;  %s271_s0 = inlined_call_operand.hbm [shape: f32[8,300], index: 0, kind: input, shape index: {}]   ;;  %s272_s1 = inlined_call_operand.hbm [shape: f32[8,300], index: 1, kind: input, shape index: {}]   ;;  %s273_s2 = inlined_call_operand.hbm [shape: f32[1,8,300], index: 2, kind: output, shape index: {0}]   ;;  %s274_s3 = inlined_call_operand.hbm [shape: f32[1,8,300], index: 3, kind: output, shape index: {1}]  }
   0x1   :  { %10 = vsyncpa [#allocation8], 0 }
   0x2   :  { %11 = vsyncpa [#allocation6], 0 }
   0x3   :  { %12 = vsyncpa [#allocation11], 0  ;;  %s228_s12 = smov [#allocation4]   ;;  %s229_s14 = smov [#allocation7]  }
   0x4   :  { %s23_s13 = sshll.u32 %s228_s12, 4  ;;  %s37_s15 = sshll.u32 %s229_s14, 4  ;;  %s24_s13 = int_to_ptr.vmem [resolvable:$true] %s23_s13  ;;  %s38_s15 = int_to_ptr.vmem [resolvable:$true] %s37_s15 }
   0x5   :  { %s148_s16 = scalar_lea.vmem %s24_s13, 384  ;;  %p153_p1 = scmp.lt.s32.totalorder %s24_s13, %s24_s13 }
   0x6   :  { %p149_p0 = scmp.ne.s32.totalorder %s24_s13, %s148_s16  ;;  %p154_p2 = scmp.lt.s32.totalorder %s148_s16, %s148_s16 }
   0x8   :  { %p155_p3 = por %p154_p2, %p153_p1 }
   0xa   :  { %p156_p4 = pnand %p155_p3, %p149_p0 }
   0xc   :  { %159 = shalt.err (!%p156_p4)
}
   0xd   :  { %26 = dma.hbm_to_vmem [thread:$0]  %s271_s0, 384, %s24_s13, [#allocation5]  }
   0xe   :  { %s168_s19 = scalar_lea.vmem %s38_s15, 384  ;;  %p173_p6 = scmp.lt.s32.totalorder %s38_s15, %s38_s15 }
   0xf   :  { %p169_p5 = scmp.ne.s32.totalorder %s38_s15, %s168_s19  ;;  %p174_p7 = scmp.lt.s32.totalorder %s168_s19, %s168_s19 }
  0x11   :  { %p175_p8 = por %p174_p7, %p173_p6 }
  0x13   :  { %p176_p9 = pnand %p175_p8, %p169_p5 }
  0x15   :  { %179 = shalt.err (!%p176_p9)
}
  0x16   :  { %40 = dma.hbm_to_vmem [thread:$0]  %s272_s1, 384, %s38_s15, [#allocation8]  }
  0x17   :  { %220 = dma.done.wait [#allocation5], 384  }
  0x18   :  { %221 = vsyncadd [#allocation5], 4294966912 }
  0x19   :  { %222 = dma.done.wait [#allocation8], 384  }
  0x1a   :  { %223 = vsyncadd [#allocation8], 4294966912  ;;  %vm57_vm0 = vcmask 359424   ;;  %v230_v0 = vmov 0.0   ;;  %v68_v1 = vld [vmem:[#allocation4] sm:$0xff]  ;;  %v71_v2 = vld [vmem:[#allocation7] sm:$0xff] }
  0x1b   :  { %58 = vst.msk [vmem:[#allocation2 + $0x10] sm:$0xff] %vm57_vm0, %v230_v0  ;;  %61 = vst.msk [vmem:[#allocation3 + $0x10] sm:$0xff] %vm57_vm0, %v230_v0  ;;  %v69_v3 = vld [vmem:[#allocation4 + $0x8] sm:$0xff]  ;;  %v74_v4 = vmul.f32 %v71_v2, %v68_v1  ;;  %v72_v5 = vld [vmem:[#allocation7 + $0x8] sm:$0xff]  ;;  %v80_v7 = vmul.f32 %v68_v1, %v68_v1  ;;  %s231_s0 = smov [#allocation9]   ;;  %s232_s22 = smov [#allocation10]  }
  0x1c   :  { %v70_v6 = vld [vmem:[#allocation4 + $0x10] sm:$0xff]  ;;  %v81_v8 = vmul.f32 %v69_v3, %v69_v3  ;;  %v75_v9 = vmul.f32 %v72_v5, %v69_v3  ;;  %v73_v11 = vld [vmem:[#allocation7 + $0x10] sm:$0xff]  ;;  %s111_s1 = sshll.u32 %s231_s0, 4  ;;  %s121_s23 = sshll.u32 %s232_s22, 4  ;;  %s112_s1 = int_to_ptr.vmem [resolvable:$true] %s111_s1  ;;  %s122_s23 = int_to_ptr.vmem [resolvable:$true] %s121_s23 }
  0x1d   :  { %v82_v12 = vmul.f32 %v70_v6, %v70_v6  ;;  %v76_v13 = vmul.f32 %v73_v11, %v70_v6  ;;  %v83_v14 = vadd.f32 %v80_v7, %v71_v2  ;;  %99 = vst [vmem:[#allocation9] sm:$0xff] %v74_v4  ;;  %s180_s24 = scalar_lea.vmem %s112_s1, 384  ;;  %p185_p11 = scmp.lt.s32.totalorder %s112_s1, %s112_s1 }
  0x1e   :  { %v84_v15 = vadd.f32 %v81_v8, %v72_v5  ;;  %100 = vst [vmem:[#allocation9 + $0x8] sm:$0xff] %v75_v9  ;;  %p181_p10 = scmp.ne.s32.totalorder %s112_s1, %s180_s24  ;;  %p186_p12 = scmp.lt.s32.totalorder %s180_s24, %s180_s24 }
  0x1f   :  { %v85_v17 = vadd.f32 %v82_v12, %v73_v11  ;;  %102 = vst [vmem:[#allocation10] sm:$0xff] %v83_v14 }
  0x20   :  { %103 = vst [vmem:[#allocation10 + $0x8] sm:$0xff] %v84_v15  ;;  %p187_p13 = por %p186_p12, %p185_p11 }
  0x22   :  { %v64_v10 = vld [vmem:[#allocation2 + $0x10] sm:$0xff]  ;;  %v67_v16 = vld [vmem:[#allocation3 + $0x10] sm:$0xff]  ;;  %p188_p0 = pnand %p187_p13, %p181_p10 }
  0x23   :  { %v79_v18 = vadd.f32 %v76_v13, %v64_v10  ;;  %v88_v19 = vadd.f32 %v85_v17, %v67_v16 }
  0x25   :  { %92 = vst.msk [vmem:[#allocation2 + $0x10] sm:$0xff] %vm57_vm0, %v79_v18  ;;  %101 = vst.msk [vmem:[#allocation9 + $0x10] sm:$0xff] %vm57_vm0, %v79_v18 }
  0x26   :  { %95 = vst.msk [vmem:[#allocation3 + $0x10] sm:$0xff] %vm57_vm0, %v88_v19  ;;  %104 = vst.msk [vmem:[#allocation10 + $0x10] sm:$0xff] %vm57_vm0, %v88_v19 }
  0x27   :  { %191 = shalt.err (!%p188_p0)
}
  0x28   :  { %114 = dma.vmem_to_hbm [thread:$0]  %s112_s1, 384, %s273_s2, [#allocation6]  }
  0x29   :  { %s200_s27 = scalar_lea.vmem %s122_s23, 384  ;;  %p205_p2 = scmp.lt.s32.totalorder %s122_s23, %s122_s23 }
  0x2a   :  { %p201_p1 = scmp.ne.s32.totalorder %s122_s23, %s200_s27  ;;  %p206_p3 = scmp.lt.s32.totalorder %s200_s27, %s200_s27 }
  0x2c   :  { %p207_p4 = por %p206_p3, %p205_p2 }
  0x2e   :  { %p208_p5 = pnand %p207_p4, %p201_p1 }
  0x30   :  { %211 = shalt.err (!%p208_p5)
}
  0x31   :  { %124 = dma.vmem_to_hbm [thread:$0]  %s122_s23, 384, %s274_s3, [#allocation11]  }
  0x32   :  { %224 = dma.done.wait [#allocation6], 384  }
  0x33   :  { %225 = vsyncadd [#allocation6], 4294966912 }
  0x34   :  { %226 = dma.done.wait [#allocation11], 384  }
  0x35   :  { %227 = vsyncadd [#allocation11], 4294966912 }
  0x36   :  { %131 = vsyncpa [#allocation5], 1 }
  0x37   :  { %132 = vsyncpa [#allocation8], 1 }
  0x38   :  { %133 = vsyncpa [#allocation6], 1 }
  0x39   :  { %134 = vsyncpa [#allocation11], 1 }

</bundles_post_ra>
